<compile_context>
chip_gen: v5e
topology: v5e:2x2
jax: 0.10.0
libtpu: 0.0.40
codegen_flags: <defaults>
</compile_context>

<pallas_src>
import functools

import jax
import jax.numpy as jnp
from jax.experimental import pallas as pl
from jax.experimental.pallas import tpu as pltpu

# ----------------------------- model config ---------------------------------
ENC_FILTERS = (16, 32, 32, 64)   # config.enc_filters
LATENT_DIM = 32                  # config.latent_dim
Z_DIM = 16                       # config.z_dim
N_PTS_OUT = 128                  # config.n_pts (decoder output points)
DEC_FEATURES = (32, 32)          # config.dec_features
ENC_BN = True                    # config.enc_bn
DEC_BN = False                   # config.dec_bn (DecoderFC default: no BN)
BN_EPS = 1e-5

BATCH = 2
N_PTS_IN = 64                    # input points (multiple of 8 -> clean pooling reshape)

# Derived static dimensions
ENC_DIMS = []
_prev = 3
for _nf in list(ENC_FILTERS) + [LATENT_DIM]:
    ENC_DIMS.append((_prev, _nf))
    _prev = _nf
ENC_DIMS = tuple(ENC_DIMS)            # ((3,16),(16,32),(32,32),(32,64),(64,32))
N_ENC = len(ENC_DIMS)                 # 5
CMAX = max(max(d) for d in ENC_DIMS)  # 64 : shared width of encoder + decoder hidden layers
OUT_W = 3 * N_PTS_OUT                 # 384 (lane-dense recon output)
STATS_W = 128                         # lane-dense packed [mu | logvar | 0]

assert max(LATENT_DIM, Z_DIM, *DEC_FEATURES) <= CMAX
assert 2 * Z_DIM <= STATS_W

# ----- "enc" slab: (N_ENC + 3, CMAX, CMAX) f32
IDX_FC1 = N_ENC          # decoder fc1 weight
IDX_FC2 = N_ENC + 1      # decoder fc2 weight
IDX_MISC = N_ENC + 2     # vectors matrix (shifts / decoder biases / expand weight)
# rows inside the misc matrix (all full CMAX-lane width -> no lane slicing)
ROW_BE = N_ENC           # decoder expand bias
ROW_BF1 = N_ENC + 1      # decoder fc1 bias
ROW_BF2 = N_ENC + 2      # decoder fc2 bias
ROW_WE = 8               # expand weight occupies rows [8, 8+Z_DIM) (tile-aligned)
# ----- "head" slab: (CMAX + 8, STATS_W); rows 0:CMAX = W_head, row CMAX = bias
HEAD_ROWS = CMAX + 8
# ----- "out"  slab: (CMAX + 8, OUT_W);  rows 0:CMAX = W_out,  row CMAX = bias
OUT_ROWS = CMAX + 8


# ----------------------------- fused Pallas kernel ---------------------------
def _vae_kernel(x_ref, noise_ref, enc_ref, head_ref, out_ref,
                recon_ref, stats_ref, *, batch, n_pts):
    """Whole PointVAE forward for the batch in one grid step, all in VMEM.

    x_ref:     (B*N, CMAX)            channels-last points, zero-padded cols 3:
    noise_ref: (B, Z_DIM)             reparameterization noise
    enc_ref:   (N_ENC+3, CMAX, CMAX)  [enc conv weights (BN folded) | fc1 | fc2 | misc]
    head_ref:  (CMAX+8, 128)          [W_mu|W_logvar] rows 0:CMAX, bias row CMAX
    out_ref:   (CMAX+8, 384)          decoder output weight rows 0:CMAX, bias row CMAX
    recon_ref: (B, 384)               lane-dense reconstruction
    stats_ref: (B, 128)               lane-dense packed [mu | logvar | 0]
    """
    misc = enc_ref[IDX_MISC]                                    # (CMAX, CMAX)

    # --- encoder: Conv1d(k=1) stack as full-width row matmuls + folded-BN shift + ReLU
    h = x_ref[...]                                              # (B*N, CMAX)
    for l in range(N_ENC):
        h = jnp.dot(h, enc_ref[l], preferred_element_type=jnp.float32)
        h = jnp.maximum(h + misc[l:l + 1, :], 0.0)

    # --- global max pool over points (torch.max(x, dim=2)) as one segmented reduce
    feat = jnp.max(h.reshape(batch, n_pts, CMAX), axis=1)       # (B, CMAX)

    # --- latent heads: one matmul straight into the lane-dense (B, 128) stats slab
    stats = (jnp.dot(feat, head_ref[0:CMAX, :],
                     preferred_element_type=jnp.float32)
             + head_ref[CMAX:CMAX + 1, :])
    stats_ref[...] = stats                                      # [mu | logvar | 0...]

    mu = stats[:, :Z_DIM]
    logvar = stats[:, Z_DIM:2 * Z_DIM]
    z = mu + jnp.exp(0.5 * logvar) * noise_ref[...]             # (B, Z_DIM)

    # --- decoder: expand -> (Linear+ReLU) x2 -> output, all at full slab width
    d = (jnp.dot(z, misc[ROW_WE:ROW_WE + Z_DIM, :],
                 preferred_element_type=jnp.float32)
         + misc[ROW_BE:ROW_BE + 1, :])                          # (B, CMAX), no ReLU
    d = jnp.maximum(jnp.dot(d, enc_ref[IDX_FC1],
                            preferred_element_type=jnp.float32)
                    + misc[ROW_BF1:ROW_BF1 + 1, :], 0.0)
    d = jnp.maximum(jnp.dot(d, enc_ref[IDX_FC2],
                            preferred_element_type=jnp.float32)
                    + misc[ROW_BF2:ROW_BF2 + 1, :], 0.0)
    recon_ref[...] = (jnp.dot(d, out_ref[0:CMAX, :],
                              preferred_element_type=jnp.float32)
                      + out_ref[CMAX:CMAX + 1, :])              # (B, 384)


# ----------------------------- parameter setup -------------------------------
def init_params(key):
    """Deterministic synthetic parameters with the same shapes as the module."""
    params = {}
    keys = iter(jax.random.split(key, 64))

    def rnd(shape, scale=0.1):
        return scale * jax.random.normal(next(keys), shape, dtype=jnp.float32)

    enc_layers = []
    for cin, cout in ENC_DIMS:
        w = rnd((cin, cout))                        # Conv1d(k=1) weight as (C_in, C_out)
        b = rnd((1, cout))
        gamma = 1.0 + rnd((1, cout), 0.05)
        beta = rnd((1, cout), 0.05)
        rmean = rnd((1, cout), 0.05)
        rvar = 1.0 + jnp.abs(rnd((1, cout), 0.05))
        enc_layers.append(dict(w=w, b=b, gamma=gamma, beta=beta, mean=rmean, var=rvar))
    params['enc_layers'] = enc_layers
    params['wmu'] = rnd((LATENT_DIM, Z_DIM))
    params['bmu'] = rnd((1, Z_DIM))
    params['wlv'] = rnd((LATENT_DIM, Z_DIM))
    params['blv'] = rnd((1, Z_DIM))

    params['we'] = rnd((Z_DIM, LATENT_DIM))         # decoder expand
    params['be'] = rnd((1, LATENT_DIM))
    prev = LATENT_DIM
    dec_layers = []
    for nf in DEC_FEATURES:
        dec_layers.append(dict(w=rnd((prev, nf)), b=rnd((1, nf))))
        prev = nf
    params['dec_layers'] = dec_layers
    params['w_out'] = rnd((DEC_FEATURES[-1], N_PTS_OUT * 3))
    params['b_out'] = rnd((1, N_PTS_OUT * 3))
    return params


def _fold_bn(layer):
    """Fold conv bias + eval-mode BatchNorm into (scale, shift)."""
    if ENC_BN:
        scale = layer['gamma'] / jnp.sqrt(layer['var'] + BN_EPS)
        shift = (layer['b'] - layer['mean']) * scale + layer['beta']
    else:
        scale = jnp.ones_like(layer['b'])
        shift = layer['b']
    return scale, shift


def prepare_slabs(params):
    """Fold BN and pack parameters into 3 zero-padded kernel-ready slabs (host-side, once)."""
    enc = jnp.zeros((N_ENC + 3, CMAX, CMAX), jnp.float32)
    misc = jnp.zeros((CMAX, CMAX), jnp.float32)
    for l, layer in enumerate(params['enc_layers']):
        cin, cout = ENC_DIMS[l]
        scale, shift = _fold_bn(layer)                         # (1, cout) each
        enc = enc.at[l, :cin, :cout].set(layer['w'] * scale)   # BN scale folded into weight
        misc = misc.at[l, :cout].set(shift[0])                 # shift row (rest stays 0)
    enc = enc.at[IDX_FC1, :LATENT_DIM, :DEC_FEATURES[0]].set(params['dec_layers'][0]['w'])
    enc = enc.at[IDX_FC2, :DEC_FEATURES[0], :DEC_FEATURES[1]].set(params['dec_layers'][1]['w'])
    misc = misc.at[ROW_BE, :LATENT_DIM].set(params['be'][0])
    misc = misc.at[ROW_BF1, :DEC_FEATURES[0]].set(params['dec_layers'][0]['b'][0])
    misc = misc.at[ROW_BF2, :DEC_FEATURES[1]].set(params['dec_layers'][1]['b'][0])
    misc = misc.at[ROW_WE:ROW_WE + Z_DIM, :LATENT_DIM].set(params['we'])
    enc = enc.at[IDX_MISC].set(misc)

    head = jnp.zeros((HEAD_ROWS, STATS_W), jnp.float32)        # [W_mu | W_logvar | 0]
    head = head.at[:LATENT_DIM, :Z_DIM].set(params['wmu'])
    head = head.at[:LATENT_DIM, Z_DIM:2 * Z_DIM].set(params['wlv'])
    head = head.at[CMAX, :Z_DIM].set(params['bmu'][0])
    head = head.at[CMAX, Z_DIM:2 * Z_DIM].set(params['blv'][0])

    out = jnp.zeros((OUT_ROWS, OUT_W), jnp.float32)
    out = out.at[:DEC_FEATURES[-1], :].set(params['w_out'])
    out = out.at[CMAX, :].set(params['b_out'][0])

    return dict(enc=enc, head=head, out=out)


# ----------------------------- wrapper ---------------------------------------
def _full_spec(shape):
    """Whole-array block; default-arg binding avoids the late-binding lambda bug."""
    nd = len(shape)
    return pl.BlockSpec(shape, lambda i, _nd=nd: (0,) * _nd)


@jax.jit
def point_vae_forward(x_b3n, noise, slabs):
    """x_b3n: (B, 3, N) like the PyTorch module.  Returns (recon, mu, logvar)."""
    B, C, N = x_b3n.shape
    # Channels-last + flatten + zero-pad channels to the slab width.  This relayout
    # is allowed to fuse into the pallas_call operand (allow_input_fusion below),
    # so it does not appear as a separate copy fusion / HBM round trip.
    x_rows = jnp.transpose(x_b3n, (0, 2, 1)).reshape(B * N, C).astype(jnp.float32)
    x_pad = jnp.pad(x_rows, ((0, 0), (0, CMAX - C)))

    args = (x_pad, noise.astype(jnp.float32), slabs['enc'], slabs['head'], slabs['out'])

    recon_flat, stats = pl.pallas_call(
        functools.partial(_vae_kernel, batch=B, n_pts=N),
        out_shape=(jax.ShapeDtypeStruct((B, OUT_W), jnp.float32),
                   jax.ShapeDtypeStruct((B, STATS_W), jnp.float32)),
        grid=(1,),
        in_specs=[_full_spec(a.shape) for a in args],
        out_specs=(_full_spec((B, OUT_W)), _full_spec((B, STATS_W))),
        compiler_params=pltpu.CompilerParams(
            dimension_semantics=("arbitrary",),
            allow_input_fusion=(True, False, False, False, False)),
    )(*args)

    recon = recon_flat.reshape(B, 3, N_PTS_OUT)   # matches torch .view((-1, 3, n_pts))
    mu = stats[:, :Z_DIM]
    logvar = stats[:, Z_DIM:2 * Z_DIM]
    return recon, mu, logvar


# ----------------------------- pure-JAX reference -----------------------------
def reference_forward(x_b3n, noise, params):
    x = jnp.transpose(x_b3n, (0, 2, 1)).astype(jnp.float32)   # (B, N, 3)
    h = x
    for layer in params['enc_layers']:
        scale, shift = _fold_bn(layer)
        h = jnp.maximum(h @ layer['w'] * scale + shift, 0.0)
    feat = jnp.max(h, axis=1)                                  # (B, LATENT)
    mu = feat @ params['wmu'] + params['bmu']
    logvar = feat @ params['wlv'] + params['blv']
    z = mu + jnp.exp(logvar * 0.5) * noise
    d = z @ params['we'] + params['be']
    for layer in params['dec_layers']:
        d = jnp.maximum(d @ layer['w'] + layer['b'], 0.0)
    d = d @ params['w_out'] + params['b_out']
    return d.reshape(-1, 3, N_PTS_OUT), mu, logvar


# ----------------------------- main -------------------------------------------
if __name__ == "__main__":
    key = jax.random.PRNGKey(0)
    k_param, k_x, k_noise = jax.random.split(key, 3)

    params = init_params(k_param)
    slabs = prepare_slabs(params)

    x = jax.random.normal(k_x, (BATCH, 3, N_PTS_IN), dtype=jnp.float32)
    # TODO(synk): torch.normal RNG has no in-kernel equivalent; reparameterization
    # noise is drawn deterministically host-side and consumed inside the kernel.
    noise = jax.random.normal(k_noise, (BATCH, Z_DIM), dtype=jnp.float32)

    recon, mu, logvar = point_vae_forward(x, noise, slabs)
    jax.block_until_ready((recon, mu, logvar))

    ref_recon, ref_mu, ref_logvar = reference_forward(x, noise, params)
    assert recon.shape == (BATCH, 3, N_PTS_OUT)
    assert mu.shape == (BATCH, Z_DIM) and logvar.shape == (BATCH, Z_DIM)
    assert jnp.allclose(recon, ref_recon, atol=5e-4, rtol=5e-4)
    assert jnp.allclose(mu, ref_mu, atol=5e-4, rtol=5e-4)
    assert jnp.allclose(logvar, ref_logvar, atol=5e-4, rtol=5e-4)

    print("KERNEL_OK")
</pallas_src>

<mosaic_0001>
module attributes {stable_mosaic.version = 11 : i64} {
  func.func @_vae_kernel(%arg0: i32, %arg1: memref<128x64xf32, #tpu.memory_space<vmem>>, %arg2: memref<2x16xf32, #tpu.memory_space<vmem>>, %arg3: memref<8x64x64xf32, #tpu.memory_space<vmem>>, %arg4: memref<72x128xf32, #tpu.memory_space<vmem>>, %arg5: memref<72x384xf32, #tpu.memory_space<vmem>>, %arg6: memref<2x384xf32, #tpu.memory_space<vmem>>, %arg7: memref<2x128xf32, #tpu.memory_space<vmem>>) attributes {dimension_semantics = [#tpu.dimension_semantics<arbitrary>], iteration_bounds = array<i64: 1>, scalar_prefetch = 0 : i64, scratch_operands = 0 : i64, tpu.core_type = #tpu.core_type<tc>, window_params = [{pipeline_mode = #tpu.pipeline_mode<synchronous>, transform_indices = @transform_0, window_bounds = array<i64: 128, 64>}, {pipeline_mode = #tpu.pipeline_mode<synchronous>, transform_indices = @transform_1, window_bounds = array<i64: 2, 16>}, {pipeline_mode = #tpu.pipeline_mode<synchronous>, transform_indices = @transform_2, window_bounds = array<i64: 8, 64, 64>}, {pipeline_mode = #tpu.pipeline_mode<synchronous>, transform_indices = @transform_3, window_bounds = array<i64: 72, 128>}, {pipeline_mode = #tpu.pipeline_mode<synchronous>, transform_indices = @transform_4, window_bounds = array<i64: 72, 384>}, {pipeline_mode = #tpu.pipeline_mode<synchronous>, transform_indices = @transform_5, window_bounds = array<i64: 2, 384>}, {pipeline_mode = #tpu.pipeline_mode<synchronous>, transform_indices = @transform_6, window_bounds = array<i64: 2, 128>}]} {
    %c7 = arith.constant 7 : index
    %c0 = arith.constant 0 : index
    %c0_0 = arith.constant 0 : index
    %0 = vector.load %arg3[%c7, %c0, %c0_0] : memref<8x64x64xf32, #tpu.memory_space<vmem>>, vector<1x64x64xf32>
    %1 = vector.shape_cast %0 : vector<1x64x64xf32> to vector<64x64xf32>
    %c0_1 = arith.constant 0 : index
    %c0_2 = arith.constant 0 : index
    %2 = vector.load %arg1[%c0_1, %c0_2] : memref<128x64xf32, #tpu.memory_space<vmem>>, vector<128x64xf32>
    %c0_3 = arith.constant 0 : index
    %c0_4 = arith.constant 0 : index
    %c0_5 = arith.constant 0 : index
    %3 = vector.load %arg3[%c0_3, %c0_4, %c0_5] : memref<8x64x64xf32, #tpu.memory_space<vmem>>, vector<1x64x64xf32>
    %4 = vector.shape_cast %3 : vector<1x64x64xf32> to vector<64x64xf32>
    %cst = arith.constant dense<0.000000e+00> : vector<128x64xf32>
    %5 = tpu.matmul %2, %4, %cst {dimension_numbers = #tpu.dot_dimension_numbers<[1], [0], [0], [1], [0, 0, 1, 1], [], []>} : vector<128x64xf32>, vector<64x64xf32>, vector<128x64xf32> -> vector<128x64xf32>
    %6 = vector.extract_strided_slice %1 {offsets = [0, 0], sizes = [1, 64], strides = [1, 1]} : vector<64x64xf32> to vector<1x64xf32>
    %7 = vector.broadcast %6 : vector<1x64xf32> to vector<128x64xf32>
    %8 = arith.addf %5, %7 : vector<128x64xf32>
    %cst_6 = arith.constant 0.000000e+00 : f32
    %9 = vector.broadcast %cst_6 : f32 to vector<128x64xf32>
    %10 = arith.maximumf %8, %9 : vector<128x64xf32>
    %c1 = arith.constant 1 : index
    %c0_7 = arith.constant 0 : index
    %c0_8 = arith.constant 0 : index
    %11 = vector.load %arg3[%c1, %c0_7, %c0_8] : memref<8x64x64xf32, #tpu.memory_space<vmem>>, vector<1x64x64xf32>
    %12 = vector.shape_cast %11 : vector<1x64x64xf32> to vector<64x64xf32>
    %cst_9 = arith.constant dense<0.000000e+00> : vector<128x64xf32>
    %13 = tpu.matmul %10, %12, %cst_9 {dimension_numbers = #tpu.dot_dimension_numbers<[1], [0], [0], [1], [0, 0, 1, 1], [], []>} : vector<128x64xf32>, vector<64x64xf32>, vector<128x64xf32> -> vector<128x64xf32>
    %14 = vector.extract_strided_slice %1 {offsets = [1, 0], sizes = [1, 64], strides = [1, 1]} : vector<64x64xf32> to vector<1x64xf32>
    %15 = vector.broadcast %14 : vector<1x64xf32> to vector<128x64xf32>
    %16 = arith.addf %13, %15 : vector<128x64xf32>
    %cst_10 = arith.constant 0.000000e+00 : f32
    %17 = vector.broadcast %cst_10 : f32 to vector<128x64xf32>
    %18 = arith.maximumf %16, %17 : vector<128x64xf32>
    %c2 = arith.constant 2 : index
    %c0_11 = arith.constant 0 : index
    %c0_12 = arith.constant 0 : index
    %19 = vector.load %arg3[%c2, %c0_11, %c0_12] : memref<8x64x64xf32, #tpu.memory_space<vmem>>, vector<1x64x64xf32>
    %20 = vector.shape_cast %19 : vector<1x64x64xf32> to vector<64x64xf32>
    %cst_13 = arith.constant dense<0.000000e+00> : vector<128x64xf32>
    %21 = tpu.matmul %18, %20, %cst_13 {dimension_numbers = #tpu.dot_dimension_numbers<[1], [0], [0], [1], [0, 0, 1, 1], [], []>} : vector<128x64xf32>, vector<64x64xf32>, vector<128x64xf32> -> vector<128x64xf32>
    %22 = vector.extract_strided_slice %1 {offsets = [2, 0], sizes = [1, 64], strides = [1, 1]} : vector<64x64xf32> to vector<1x64xf32>
    %23 = vector.broadcast %22 : vector<1x64xf32> to vector<128x64xf32>
    %24 = arith.addf %21, %23 : vector<128x64xf32>
    %cst_14 = arith.constant 0.000000e+00 : f32
    %25 = vector.broadcast %cst_14 : f32 to vector<128x64xf32>
    %26 = arith.maximumf %24, %25 : vector<128x64xf32>
    %c3 = arith.constant 3 : index
    %c0_15 = arith.constant 0 : index
    %c0_16 = arith.constant 0 : index
    %27 = vector.load %arg3[%c3, %c0_15, %c0_16] : memref<8x64x64xf32, #tpu.memory_space<vmem>>, vector<1x64x64xf32>
    %28 = vector.shape_cast %27 : vector<1x64x64xf32> to vector<64x64xf32>
    %cst_17 = arith.constant dense<0.000000e+00> : vector<128x64xf32>
    %29 = tpu.matmul %26, %28, %cst_17 {dimension_numbers = #tpu.dot_dimension_numbers<[1], [0], [0], [1], [0, 0, 1, 1], [], []>} : vector<128x64xf32>, vector<64x64xf32>, vector<128x64xf32> -> vector<128x64xf32>
    %30 = vector.extract_strided_slice %1 {offsets = [3, 0], sizes = [1, 64], strides = [1, 1]} : vector<64x64xf32> to vector<1x64xf32>
    %31 = vector.broadcast %30 : vector<1x64xf32> to vector<128x64xf32>
    %32 = arith.addf %29, %31 : vector<128x64xf32>
    %cst_18 = arith.constant 0.000000e+00 : f32
    %33 = vector.broadcast %cst_18 : f32 to vector<128x64xf32>
    %34 = arith.maximumf %32, %33 : vector<128x64xf32>
    %c4 = arith.constant 4 : index
    %c0_19 = arith.constant 0 : index
    %c0_20 = arith.constant 0 : index
    %35 = vector.load %arg3[%c4, %c0_19, %c0_20] : memref<8x64x64xf32, #tpu.memory_space<vmem>>, vector<1x64x64xf32>
    %36 = vector.shape_cast %35 : vector<1x64x64xf32> to vector<64x64xf32>
    %cst_21 = arith.constant dense<0.000000e+00> : vector<128x64xf32>
    %37 = tpu.matmul %34, %36, %cst_21 {dimension_numbers = #tpu.dot_dimension_numbers<[1], [0], [0], [1], [0, 0, 1, 1], [], []>} : vector<128x64xf32>, vector<64x64xf32>, vector<128x64xf32> -> vector<128x64xf32>
    %38 = vector.extract_strided_slice %1 {offsets = [4, 0], sizes = [1, 64], strides = [1, 1]} : vector<64x64xf32> to vector<1x64xf32>
    %39 = vector.broadcast %38 : vector<1x64xf32> to vector<128x64xf32>
    %40 = arith.addf %37, %39 : vector<128x64xf32>
    %cst_22 = arith.constant 0.000000e+00 : f32
    %41 = vector.broadcast %cst_22 : f32 to vector<128x64xf32>
    %42 = arith.maximumf %40, %41 : vector<128x64xf32>
    %43 = vector.shape_cast %42 : vector<128x64xf32> to vector<2x64x64xf32>
    %cst_23 = arith.constant dense<0xFF800000> : vector<2x64xf32>
    %44 = vector.multi_reduction <maximumf>, %43, %cst_23 [1] : vector<2x64x64xf32> to vector<2x64xf32>
    %c0_24 = arith.constant 0 : index
    %c0_25 = arith.constant 0 : index
    %45 = vector.load %arg4[%c0_24, %c0_25] : memref<72x128xf32, #tpu.memory_space<vmem>>, vector<64x128xf32>
    %cst_26 = arith.constant dense<0.000000e+00> : vector<2x128xf32>
    %46 = tpu.matmul %44, %45, %cst_26 {dimension_numbers = #tpu.dot_dimension_numbers<[1], [0], [0], [1], [0, 0, 1, 1], [], []>} : vector<2x64xf32>, vector<64x128xf32>, vector<2x128xf32> -> vector<2x128xf32>
    %c64 = arith.constant 64 : index
    %c0_27 = arith.constant 0 : index
    %47 = vector.load %arg4[%c64, %c0_27] : memref<72x128xf32, #tpu.memory_space<vmem>>, vector<1x128xf32>
    %48 = vector.broadcast %47 : vector<1x128xf32> to vector<2x128xf32>
    %49 = arith.addf %46, %48 : vector<2x128xf32>
    %c0_28 = arith.constant 0 : index
    %c0_29 = arith.constant 0 : index
    %50 = vector.load %arg7[%c0_28, %c0_29] : memref<2x128xf32, #tpu.memory_space<vmem>>, vector<2x128xf32>
    tpu.vector_store %arg7[%c0_28, %c0_29], %49 {strides = array<i32>} : memref<2x128xf32, #tpu.memory_space<vmem>>, vector<2x128xf32>,
    %51 = vector.extract_strided_slice %49 {offsets = [0, 0], sizes = [2, 16], strides = [1, 1]} : vector<2x128xf32> to vector<2x16xf32>
    %52 = vector.extract_strided_slice %49 {offsets = [0, 16], sizes = [2, 16], strides = [1, 1]} : vector<2x128xf32> to vector<2x16xf32>
    %cst_30 = arith.constant 5.000000e-01 : f32
    %53 = vector.broadcast %cst_30 : f32 to vector<2x16xf32>
    %54 = arith.mulf %53, %52 : vector<2x16xf32>
    %55 = math.exp %54 : vector<2x16xf32>
    %c0_31 = arith.constant 0 : index
    %c0_32 = arith.constant 0 : index
    %56 = vector.load %arg2[%c0_31, %c0_32] : memref<2x16xf32, #tpu.memory_space<vmem>>, vector<2x16xf32>
    %57 = arith.mulf %55, %56 : vector<2x16xf32>
    %58 = arith.addf %51, %57 : vector<2x16xf32>
    %59 = vector.extract_strided_slice %1 {offsets = [8, 0], sizes = [16, 64], strides = [1, 1]} : vector<64x64xf32> to vector<16x64xf32>
    %cst_33 = arith.constant dense<0.000000e+00> : vector<2x64xf32>
    %60 = tpu.matmul %58, %59, %cst_33 {dimension_numbers = #tpu.dot_dimension_numbers<[1], [0], [0], [1], [0, 0, 1, 1], [], []>} : vector<2x16xf32>, vector<16x64xf32>, vector<2x64xf32> -> vector<2x64xf32>
    %61 = vector.extract_strided_slice %1 {offsets = [5, 0], sizes = [1, 64], strides = [1, 1]} : vector<64x64xf32> to vector<1x64xf32>
    %62 = vector.broadcast %61 : vector<1x64xf32> to vector<2x64xf32>
    %63 = arith.addf %60, %62 : vector<2x64xf32>
    %c5 = arith.constant 5 : index
    %c0_34 = arith.constant 0 : index
    %c0_35 = arith.constant 0 : index
    %64 = vector.load %arg3[%c5, %c0_34, %c0_35] : memref<8x64x64xf32, #tpu.memory_space<vmem>>, vector<1x64x64xf32>
    %65 = vector.shape_cast %64 : vector<1x64x64xf32> to vector<64x64xf32>
    %cst_36 = arith.constant dense<0.000000e+00> : vector<2x64xf32>
    %66 = tpu.matmul %63, %65, %cst_36 {dimension_numbers = #tpu.dot_dimension_numbers<[1], [0], [0], [1], [0, 0, 1, 1], [], []>} : vector<2x64xf32>, vector<64x64xf32>, vector<2x64xf32> -> vector<2x64xf32>
    %67 = vector.extract_strided_slice %1 {offsets = [6, 0], sizes = [1, 64], strides = [1, 1]} : vector<64x64xf32> to vector<1x64xf32>
    %68 = vector.broadcast %67 : vector<1x64xf32> to vector<2x64xf32>
    %69 = arith.addf %66, %68 : vector<2x64xf32>
    %cst_37 = arith.constant 0.000000e+00 : f32
    %70 = vector.broadcast %cst_37 : f32 to vector<2x64xf32>
    %71 = arith.maximumf %69, %70 : vector<2x64xf32>
    %c6 = arith.constant 6 : index
    %c0_38 = arith.constant 0 : index
    %c0_39 = arith.constant 0 : index
    %72 = vector.load %arg3[%c6, %c0_38, %c0_39] : memref<8x64x64xf32, #tpu.memory_space<vmem>>, vector<1x64x64xf32>
    %73 = vector.shape_cast %72 : vector<1x64x64xf32> to vector<64x64xf32>
    %cst_40 = arith.constant dense<0.000000e+00> : vector<2x64xf32>
    %74 = tpu.matmul %71, %73, %cst_40 {dimension_numbers = #tpu.dot_dimension_numbers<[1], [0], [0], [1], [0, 0, 1, 1], [], []>} : vector<2x64xf32>, vector<64x64xf32>, vector<2x64xf32> -> vector<2x64xf32>
    %75 = vector.extract_strided_slice %1 {offsets = [7, 0], sizes = [1, 64], strides = [1, 1]} : vector<64x64xf32> to vector<1x64xf32>
    %76 = vector.broadcast %75 : vector<1x64xf32> to vector<2x64xf32>
    %77 = arith.addf %74, %76 : vector<2x64xf32>
    %cst_41 = arith.constant 0.000000e+00 : f32
    %78 = vector.broadcast %cst_41 : f32 to vector<2x64xf32>
    %79 = arith.maximumf %77, %78 : vector<2x64xf32>
    %c0_42 = arith.constant 0 : index
    %c0_43 = arith.constant 0 : index
    %80 = vector.load %arg5[%c0_42, %c0_43] : memref<72x384xf32, #tpu.memory_space<vmem>>, vector<64x384xf32>
    %cst_44 = arith.constant dense<0.000000e+00> : vector<2x384xf32>
    %81 = tpu.matmul %79, %80, %cst_44 {dimension_numbers = #tpu.dot_dimension_numbers<[1], [0], [0], [1], [0, 0, 1, 1], [], []>} : vector<2x64xf32>, vector<64x384xf32>, vector<2x384xf32> -> vector<2x384xf32>
    %c64_45 = arith.constant 64 : index
    %c0_46 = arith.constant 0 : index
    %82 = vector.load %arg5[%c64_45, %c0_46] : memref<72x384xf32, #tpu.memory_space<vmem>>, vector<1x384xf32>
    %83 = vector.broadcast %82 : vector<1x384xf32> to vector<2x384xf32>
    %84 = arith.addf %81, %83 : vector<2x384xf32>
    %c0_47 = arith.constant 0 : index
    %c0_48 = arith.constant 0 : index
    %85 = vector.load %arg6[%c0_47, %c0_48] : memref<2x384xf32, #tpu.memory_space<vmem>>, vector<2x384xf32>
    tpu.vector_store %arg6[%c0_47, %c0_48], %84 {strides = array<i32>} : memref<2x384xf32, #tpu.memory_space<vmem>>, vector<2x384xf32>,
    return
  }
  func.func @transform_0(%arg0: i32) -> (i32, i32) {
    %c0_i32 = arith.constant 0 : i32
    %c0_i32_0 = arith.constant 0 : i32
    %c0_i32_1 = arith.constant 0 : i32
    return %c0_i32, %c0_i32_0 : i32, i32
  }
  func.func @transform_1(%arg0: i32) -> (i32, i32) {
    %c0_i32 = arith.constant 0 : i32
    %c0_i32_0 = arith.constant 0 : i32
    %c0_i32_1 = arith.constant 0 : i32
    return %c0_i32, %c0_i32_0 : i32, i32
  }
  func.func @transform_2(%arg0: i32) -> (i32, i32, i32) {
    %c0_i32 = arith.constant 0 : i32
    %c0_i32_0 = arith.constant 0 : i32
    %c0_i32_1 = arith.constant 0 : i32
    %c0_i32_2 = arith.constant 0 : i32
    return %c0_i32, %c0_i32_0, %c0_i32_1 : i32, i32, i32
  }
  func.func @transform_3(%arg0: i32) -> (i32, i32) {
    %c0_i32 = arith.constant 0 : i32
    %c0_i32_0 = arith.constant 0 : i32
    %c0_i32_1 = arith.constant 0 : i32
    return %c0_i32, %c0_i32_0 : i32, i32
  }
  func.func @transform_4(%arg0: i32) -> (i32, i32) {
    %c0_i32 = arith.constant 0 : i32
    %c0_i32_0 = arith.constant 0 : i32
    %c0_i32_1 = arith.constant 0 : i32
    return %c0_i32, %c0_i32_0 : i32, i32
  }
  func.func @transform_5(%arg0: i32) -> (i32, i32) {
    %c0_i32 = arith.constant 0 : i32
    %c0_i32_0 = arith.constant 0 : i32
    %c0_i32_1 = arith.constant 0 : i32
    return %c0_i32, %c0_i32_0 : i32, i32
  }
  func.func @transform_6(%arg0: i32) -> (i32, i32) {
    %c0_i32 = arith.constant 0 : i32
    %c0_i32_0 = arith.constant 0 : i32
    %c0_i32_1 = arith.constant 0 : i32
    return %c0_i32, %c0_i32_0 : i32, i32
  }
}

</mosaic_0001>

<bundles_post_ra>
// kernel: point_vae_forward.2
= control target key start
LH: loop header
LB: loop body
LE: loop exit
PB: predicated region body
PF: predicated region fallthrough
CT: control target
= control target key end

     0   :  { %s1865_s0 = inlined_call_operand.vmem [shape: f32[2,16], index: 0, kind: input, shape index: {}]   ;;  %s1866_s1 = inlined_call_operand.hbm [shape: f32[8,64,64], index: 1, kind: input, shape index: {}]   ;;  %s1867_s2 = inlined_call_operand.vmem [shape: f32[72,128], index: 2, kind: input, shape index: {}]   ;;  %s1868_s3 = inlined_call_operand.hbm [shape: f32[72,384], index: 3, kind: input, shape index: {}]   ;;  %s1869_s4 = inlined_call_operand.vmem [shape: f32[128,3], index: 4, kind: input, shape index: {}]   ;;  %s1870_s5 = inlined_call_operand.<no memory space> [shape: f32[], index: 5, kind: input, shape index: {}]   ;;  %s1871_s6 = inlined_call_operand.hbm [shape: f32[2,384], index: 6, kind: output, shape index: {0}]   ;;  %s1872_s7 = inlined_call_operand.vmem [shape: f32[2,128], index: 7, kind: output, shape index: {1}]  }
   0x1   :  { %v1522_v0 = vstv %s1870_s5 }
   0x2   :  { %14 = vsyncpa [#allocation8], 0 }
   0x3   :  { %15 = vsyncpa [#allocation11], 0 }
   0x4   :  { %16 = vsyncpa [#allocation9], 0  ;;  %s25_s28 = sshll.u32 %s1866_s1, 4  ;;  %s1470_s29 = smov [#allocation7]   ;;  %s26_s28 = int_to_ptr.hbm [resolvable:$true] %s25_s28 }
   0x5   :  { %s27_s30 = sshll.u32 %s1470_s29, 4  ;;  %s40_s10 = sshll.u32 %s1868_s3, 4  ;;  %s28_s30 = int_to_ptr.vmem [resolvable:$true] %s27_s30  ;;  %s41_s10 = int_to_ptr.hbm [resolvable:$true] %s40_s10 }
   0x6   :  { %s1471_s11 = smov 128   ;;  %s1472_s12 = smov 8  }
   0x7   :  { %33 = dma.hbm_to_vmem [thread:$0]  %s26_s28, 8192, %s28_s30, [#allocation8], %s1471_s11, %s1471_s11, %s1472_s12  }
   0x8   :  { %s1473_s5 = smov [#allocation10]   ;;  %s1474_s14 = smov 384  }
   0x9   :  { %s42_s13 = sshll.u32 %s1473_s5, 4  ;;  %s1475_s15 = smov 24   ;;  %s43_s13 = int_to_ptr.vmem [resolvable:$true] %s42_s13 }
   0xa   :  { %48 = dma.hbm_to_vmem [thread:$0]  %s41_s10, 3456, %s43_s13, [#allocation11], %s1474_s14, %s1474_s14, %s1475_s15  }
   0xb   :  { %1464 = dma.done.wait [#allocation8], 8192  }
   0xc   :  { %1465 = vsyncadd [#allocation8], 4294959104 }
   0xd   :  { %1466 = dma.done.wait [#allocation11], 3456  }
   0xe   :  { %1467 = vsyncadd [#allocation11], 4294963840  ;;  %v258_v1 = vld [vmem:[#allocation7 + $0x38] sm:$0xff]  ;;  %v257_v2 = vld [vmem:[#allocation7 + $0x30] sm:$0xff]  ;;  %v58_v4 = vlaneseq  ;;  %vm260_vm1 = vcmask 523264   ;;  %s1476_s13 = smov 16  }
   0xf   :  { %317 = vmatpush.msra.mxu0 %v258_v1  ;;  %1363 = vmatpush.msra.mxu2 %v258_v1  ;;  %v256_v3 = vld [vmem:[#allocation7 + $0x28] sm:$0xff]  ;;  %v255_v5 = vld [vmem:[#allocation7 + $0x20] sm:$0xff]  ;;  %v254_v6 = vld [vmem:[#allocation7 + $0x18] sm:$0xff]  ;;  %vm1000_vm2 = vcmask 1041409   ;;  %s1477_s3 = smov 112   ;;  %vm1040_vm3 = vcmask 130048  }
  0x10   :  { %1364 = vmatpush.msra.mxu3 %v258_v1  ;;  %v1530_v7 = vand.u32 127, %v58_v4  ;;  %v253_v8 = vld [vmem:[#allocation7 + $0x10] sm:$0xff]  ;;  %v252_v9 = vld [vmem:[#allocation7 + $0x8] sm:$0xff]  ;;  %v57_v10 = vld [vmem:[%s1869_s4] sm:$0xff]  ;;  %vm1233_vm4 = vcmask 1041408   ;;  %s1246_s18 = sshll.u32 %s1871_s6, 4  ;;  %s1247_s18 = int_to_ptr.hbm [resolvable:$true] %s1246_s18 }
  0x11   :  { %318 = vmatpush.msra.mxu0 %v257_v2  ;;  %1365 = vmatpush.msra.mxu2 %v257_v2  ;;  %v251_v11 = vld [vmem:[#allocation7] sm:$0xff]  ;;  %v1261_v13 = vld [vmem:[%s1869_s4 + $0x8] sm:$0xff]  ;;  %v1262_v15 = vld [vmem:[%s1869_s4 + $0x10] sm:$0xff]  ;;  %vm1235_vm5 = vcmask 1043456  }
  0x12   :  { %1366 = vmatpush.msra.mxu3 %v257_v2  ;;  %vm61_vm0 = vcmp.lt.s32.totalorder %v1530_v7, 3  ;;  %v1267_v17 = vld [vmem:[%s1869_s4 + $0x38] sm:$0xff]  ;;  %v397_v23 = vld [vmem:[#allocation7 + $0x70] sm:$0xff]  ;;  %v1268_v24 = vld [vmem:[%s1869_s4 + $0x40] sm:$0xff] }
  0x13   :  { %319 = vmatpush.msra.mxu0 %v256_v3  ;;  %1367 = vmatpush.msra.mxu2 %v256_v3  ;;  %v62_v12 = vsel %vm61_vm0, %v57_v10, %v1522_v0  ;;  %v72_v14 = vsel %vm61_vm0, %v1261_v13, %v1522_v0  ;;  %v83_v16 = vsel %vm61_vm0, %v1262_v15, %v1522_v0  ;;  %v1271_v19 = vld [vmem:[%s1869_s4 + $0x58] sm:$0xff]  ;;  %v1272_v26 = vld [vmem:[%s1869_s4 + $0x60] sm:$0xff]  ;;  %v396_v27 = vld [vmem:[#allocation7 + $0x68] sm:$0xff] }
  0x14   :  { %1368 = vmatpush.msra.mxu3 %v256_v3  ;;  %v138_v18 = vsel %vm61_vm0, %v1267_v17, %v1522_v0  ;;  %v1263_v20 = vld [vmem:[%s1869_s4 + $0x18] sm:$0xff]  ;;  %v182_v21 = vsel %vm61_vm0, %v1271_v19, %v1522_v0  ;;  %v149_v28 = vsel %vm61_vm0, %v1268_v24, %v1522_v0  ;;  %v395_v29 = vld [vmem:[#allocation7 + $0x60] sm:$0xff]  ;;  %v193_v30 = vsel %vm61_vm0, %v1272_v26, %v1522_v0  ;;  %v1269_v33 = vld [vmem:[%s1869_s4 + $0x48] sm:$0xff] }
  0x15   :  { %320 = vmatpush.msra.mxu0 %v255_v5  ;;  %1369 = vmatpush.msra.mxu2 %v255_v5  ;;  %v398_v22 = vld [vmem:[#allocation7 + $0x78] sm:$0xff]  ;;  %v94_v25 = vsel %vm61_vm0, %v1263_v20, %v1522_v0  ;;  %v1264_v32 = vld [vmem:[%s1869_s4 + $0x20] sm:$0xff]  ;;  %v1273_v35 = vld [vmem:[%s1869_s4 + $0x68] sm:$0xff]  ;;  %v160_v36 = vsel %vm61_vm0, %v1269_v33, %v1522_v0 }
  0x16   :  { %1370 = vmatpush.msra.mxu3 %v255_v5  ;;  %456 = vmatpush.msra.mxu1 %v398_v22  ;;  %v394_v31 = vld [vmem:[#allocation7 + $0x58] sm:$0xff]  ;;  %v105_v34 = vsel %vm61_vm0, %v1264_v32, %v1522_v0  ;;  %v204_v37 = vsel %vm61_vm0, %v1273_v35, %v1522_v0  ;;  %v1265_v38 = vld [vmem:[%s1869_s4 + $0x28] sm:$0xff]  ;;  %v1270_v39 = vld [vmem:[%s1869_s4 + $0x50] sm:$0xff] }
  0x17   :  { %321 = vmatpush.msra.mxu0 %v254_v6  ;;  %1371 = vmatpush.msra.mxu2 %v254_v6  ;;  %v116_v40 = vsel %vm61_vm0, %v1265_v38, %v1522_v0  ;;  %v1274_v41 = vld [vmem:[%s1869_s4 + $0x70] sm:$0xff]  ;;  %v171_v42 = vsel %vm61_vm0, %v1270_v39, %v1522_v0  ;;  %v1275_v46 = vld [vmem:[%s1869_s4 + $0x78] sm:$0xff]  ;;  %v392_v49 = vld [vmem:[#allocation7 + $0x48] sm:$0xff] }
  0x18   :  { %1372 = vmatpush.msra.mxu3 %v254_v6  ;;  %457 = vmatpush.msra.mxu1 %v397_v23  ;;  %v215_v43 = vsel %vm61_vm0, %v1274_v41, %v1522_v0  ;;  %v1266_v44 = vld [vmem:[%s1869_s4 + $0x30] sm:$0xff]  ;;  %v226_v47 = vsel %vm61_vm0, %v1275_v46, %v1522_v0  ;;  %v391_v50 = vld [vmem:[#allocation7 + $0x40] sm:$0xff]  ;;  %v535_v24 = vld [vmem:[#allocation7 + $0xa8] sm:$0xff] }
  0x19   :  { %322 = vmatpush.msra.mxu0 %v253_v8  ;;  %1373 = vmatpush.msra.mxu2 %v253_v8  ;;  %v127_v45 = vsel %vm61_vm0, %v1266_v44, %v1522_v0  ;;  %v393_v48 = vld [vmem:[#allocation7 + $0x50] sm:$0xff]  ;;  %v1645_v51 = vld [vmem:[#allocation7 + $0x1c0] sm:$0xff]  ;;  %v531_v33 = vld [vmem:[#allocation7 + $0x88] sm:$0xff] }
  0x1a   :  { %1374 = vmatpush.msra.mxu3 %v253_v8  ;;  %458 = vmatpush.msra.mxu1 %v396_v27  ;;  %v1648_v52 = vperm.slane %v1645_v51, 0  ;;  %v536_v19 = vld [vmem:[#allocation7 + $0xb0] sm:$0xff] }
  0x1b   :  { %323 = vmatpush.msra.mxu0 %v252_v9  ;;  %1375 = vmatpush.msra.mxu2 %v252_v9 }
  0x1c   :  { %1376 = vmatpush.msra.mxu3 %v252_v9  ;;  %459 = vmatpush.msra.mxu1 %v395_v29  ;;  %v533_v29 = vld [vmem:[#allocation7 + $0x98] sm:$0xff] }
  0x1d   :  { %324 = vmatpush.msra.mxu0 %v251_v11  ;;  %1377 = vmatpush.msra.mxu2 %v251_v11 }
  0x1e   :  { %1276 = vmatmul.msk.f32.vlgmr.msra.gmra.mxu0 %vm260_vm1, %v62_v12  ;;  %1378 = vmatpush.msra.mxu3 %v251_v11 }
  0x1f   :  { %1283 = vmatmul.msk.f32.vlgmr.msra.gmra.mxu2 %vm260_vm1, %v138_v18  ;;  %1287 = vmatmul.msk.f32.vlgmr.msra.gmra.mxu3 %vm260_vm1, %v182_v21  ;;  %v537_v18 = vld [vmem:[#allocation7 + $0xb8] sm:$0xff] }
  0x20   :  { %460 = vmatpush.msra.mxu1 %v394_v31  ;;  %595 = vmatpush.msrb.mxu2 %v537_v18 }
  0x22   :  { %461 = vmatpush.msra.mxu1 %v393_v48  ;;  %596 = vmatpush.msrb.mxu2 %v536_v19  ;;  %v673_v19 = vld [vmem:[#allocation7 + $0xe0] sm:$0xff] }
  0x24   :  { %462 = vmatpush.msra.mxu1 %v392_v49  ;;  %597 = vmatpush.msrb.mxu2 %v535_v24  ;;  %v671_v24 = vld [vmem:[#allocation7 + $0xd0] sm:$0xff] }
  0x26   :  { %1277 = vmatmul.msk.f32.gmra.mxu0 %vm260_vm1, %v72_v14  ;;  %463 = vmatpush.msra.mxu1 %v391_v50 }
  0x27   :  { %1284 = vmatmul.msk.f32.gmra.mxu2 %vm260_vm1, %v149_v28  ;;  %1288 = vmatmul.msk.f32.gmra.mxu3 %vm260_vm1, %v193_v30  ;;  %v532_v30 = vld [vmem:[#allocation7 + $0x90] sm:$0xff] }
  0x2e   :  { %1278 = vmatmul.msk.f32.gmra.mxu0 %vm260_vm1, %v83_v16 }
  0x2f   :  { %1285 = vmatmul.msk.f32.gmra.mxu2 %vm260_vm1, %v160_v36  ;;  %1289 = vmatmul.msk.f32.gmra.mxu3 %vm260_vm1, %v204_v37  ;;  %v530_v37 = vld [vmem:[#allocation7 + $0x80] sm:$0xff] }
  0x36   :  { %1279 = vmatmul.msk.f32.gmra.mxu0 %vm260_vm1, %v94_v25  ;;  %v534_v25 = vld [vmem:[#allocation7 + $0xa0] sm:$0xff] }
  0x37   :  { %1286 = vmatmul.msk.f32.gmra.mxu2 %vm260_vm1, %v171_v42  ;;  %1290 = vmatmul.msk.f32.gmra.mxu3 %vm260_vm1, %v215_v43 }
  0x38   :  { %598 = vmatpush.msrb.mxu2 %v534_v25  ;;  %v670_v25 = vld [vmem:[#allocation7 + $0xc8] sm:$0xff] }
  0x3a   :  { %599 = vmatpush.msrb.mxu2 %v533_v29 }
  0x3c   :  { %600 = vmatpush.msrb.mxu2 %v532_v30 }
  0x3e   :  { %1280 = vmatmul.msk.f32.gmra.mxu0 %vm260_vm1, %v105_v34  ;;  %601 = vmatpush.msrb.mxu2 %v531_v33 }
  0x3f   :  { %1291 = vmatmul.msk.f32.gmra.mxu3 %vm260_vm1, %v226_v47 }
  0x40   :  { %602 = vmatpush.msrb.mxu2 %v530_v37 }
  0x46   :  { %1281 = vmatmul.msk.f32.gmra.mxu0 %vm260_vm1, %v116_v40 }
  0x4e   :  { %1282 = vmatmul.msk.f32.gmra.mxu0 %vm260_vm1, %v127_v45  ;;  %v1683_v45 = vperm.slane %v1645_v51, 1 }
  0x9b   :  { %v326_v53 = vpop.f32.mrf.mxu0 }
  0x9c   :  { %v327_v54 = vadd.f32 %v326_v53, %v1648_v52 }
  0x9e   :  { %v374_v55 = vmax.f32 %v327_v54, 0.0 }
  0xa0   :  { %1292 = vmatmul.msk.f32.vlgmr.msra.gmra.mxu1 %vm260_vm1, %v374_v55 }
  0xa2   :  { %v347_v7 = vpop.f32.mrf.mxu2  ;;  %v359_v22 = vpop.f32.mrf.mxu3 }
  0xa3   :  { %v329_v56 = vpop.f32.mrf.mxu0  ;;  %v348_v11 = vadd.f32 %v347_v7, %v1648_v52  ;;  %v360_v28 = vadd.f32 %v359_v22, %v1648_v52 }
  0xa4   :  { %v330_v57 = vadd.f32 %v329_v56, %v1648_v52 }
  0xa5   :  { %v381_v13 = vmax.f32 %v348_v11, 0.0  ;;  %v385_v31 = vmax.f32 %v360_v28, 0.0 }
  0xa6   :  { %v375_v58 = vmax.f32 %v330_v57, 0.0 }
  0xa8   :  { %1293 = vmatmul.msk.f32.gmra.mxu1 %vm260_vm1, %v375_v58 }
  0xaa   :  { %v350_v12 = vpop.f32.mrf.mxu2  ;;  %v362_v27 = vpop.f32.mrf.mxu3 }
  0xab   :  { %v332_v59 = vpop.f32.mrf.mxu0  ;;  %v351_v14 = vadd.f32 %v350_v12, %v1648_v52  ;;  %v363_v32 = vadd.f32 %v362_v27, %v1648_v52 }
  0xac   :  { %v333_v60 = vadd.f32 %v332_v59, %v1648_v52 }
  0xad   :  { %v382_v16 = vmax.f32 %v351_v14, 0.0  ;;  %v386_v35 = vmax.f32 %v363_v32, 0.0  ;;  %v675_v14 = vld [vmem:[#allocation7 + $0xf0] sm:$0xff]  ;;  %v669_v32 = vld [vmem:[#allocation7 + $0xc0] sm:$0xff] }
  0xae   :  { %v376_v61 = vmax.f32 %v333_v60, 0.0 }
  0xb0   :  { %1294 = vmatmul.msk.f32.gmra.mxu1 %vm260_vm1, %v376_v61 }
  0xb2   :  { %v353_v15 = vpop.f32.mrf.mxu2  ;;  %v365_v34 = vpop.f32.mrf.mxu3 }
  0xb3   :  { %v335_v62 = vpop.f32.mrf.mxu0  ;;  %v354_v17 = vadd.f32 %v353_v15, %v1648_v52  ;;  %v366_v36 = vadd.f32 %v365_v34, %v1648_v52  ;;  %v674_v15 = vld [vmem:[#allocation7 + $0xe8] sm:$0xff] }
  0xb4   :  { %v336_v63 = vadd.f32 %v335_v62, %v1648_v52 }
  0xb5   :  { %v383_v20 = vmax.f32 %v354_v17, 0.0  ;;  %v387_v39 = vmax.f32 %v366_v36, 0.0 }
  0xb6   :  { %v377_v0 = vmax.f32 %v336_v63, 0.0 }
  0xb8   :  { %1295 = vmatmul.msk.f32.gmra.mxu1 %vm260_vm1, %v377_v0 }
  0xba   :  { %v356_v21 = vpop.f32.mrf.mxu2  ;;  %v368_v38 = vpop.f32.mrf.mxu3 }
  0xbb   :  { %v338_v1 = vpop.f32.mrf.mxu0  ;;  %v357_v23 = vadd.f32 %v356_v21, %v1648_v52  ;;  %v369_v40 = vadd.f32 %v368_v38, %v1648_v52 }
  0xbc   :  { %v339_v2 = vadd.f32 %v338_v1, %v1648_v52 }
  0xbd   :  { %v384_v26 = vmax.f32 %v357_v23, 0.0  ;;  %v388_v41 = vmax.f32 %v369_v40, 0.0  ;;  %v672_v23 = vld [vmem:[#allocation7 + $0xd8] sm:$0xff] }
  0xbe   :  { %v378_v3 = vmax.f32 %v339_v2, 0.0 }
  0xc0   :  { %1296 = vmatmul.msk.f32.gmra.mxu1 %vm260_vm1, %v378_v3 }
  0xc2   :  { %v371_v42 = vpop.f32.mrf.mxu3 }
  0xc3   :  { %v341_v4 = vpop.f32.mrf.mxu0  ;;  %v372_v43 = vadd.f32 %v371_v42, %v1648_v52 }
  0xc4   :  { %v342_v5 = vadd.f32 %v341_v4, %v1648_v52 }
  0xc5   :  { %v389_v44 = vmax.f32 %v372_v43, 0.0 }
  0xc6   :  { %v379_v6 = vmax.f32 %v342_v5, 0.0 }
  0xc8   :  { %1297 = vmatmul.msk.f32.gmra.mxu1 %vm260_vm1, %v379_v6 }
  0xcb   :  { %v344_v8 = vpop.f32.mrf.mxu0 }
  0xcc   :  { %v345_v9 = vadd.f32 %v344_v8, %v1648_v52 }
  0xce   :  { %v380_v10 = vmax.f32 %v345_v9, 0.0 }
  0xd0   :  { %1298 = vmatmul.msk.f32.gmra.mxu1 %vm260_vm1, %v380_v10  ;;  %v676_v10 = vld [vmem:[#allocation7 + $0xf8] sm:$0xff] }
  0xd1   :  { %734 = vmatpush.msrb.mxu3 %v676_v10  ;;  %v812_v10 = vld [vmem:[#allocation7 + $0x120] sm:$0xff] }
  0xd3   :  { %735 = vmatpush.msrb.mxu3 %v675_v14  ;;  %v811_v14 = vld [vmem:[#allocation7 + $0x118] sm:$0xff] }
  0xd5   :  { %736 = vmatpush.msrb.mxu3 %v674_v15 }
  0xd7   :  { %737 = vmatpush.msrb.mxu3 %v673_v19  ;;  %v809_v19 = vld [vmem:[#allocation7 + $0x108] sm:$0xff] }
  0xd8   :  { %1299 = vmatmul.msk.f32.gmra.mxu1 %vm260_vm1, %v381_v13 }
  0xd9   :  { %738 = vmatpush.msrb.mxu3 %v672_v23 }
  0xdb   :  { %739 = vmatpush.msrb.mxu3 %v671_v24 }
  0xdd   :  { %740 = vmatpush.msrb.mxu3 %v670_v25 }
  0xdf   :  { %741 = vmatpush.msrb.mxu3 %v669_v32 }
  0xe0   :  { %1300 = vmatmul.msk.f32.gmra.mxu1 %vm260_vm1, %v382_v16 }
  0xe8   :  { %1301 = vmatmul.msk.f32.gmra.mxu1 %vm260_vm1, %v383_v20 }
  0xf0   :  { %1302 = vmatmul.msk.f32.gmra.mxu1 %vm260_vm1, %v384_v26 }
  0xf8   :  { %1303 = vmatmul.msk.f32.gmra.mxu1 %vm260_vm1, %v385_v31 }
 0x100   :  { %1304 = vmatmul.msk.f32.gmra.mxu1 %vm260_vm1, %v386_v35 }
 0x108   :  { %1305 = vmatmul.msk.f32.gmra.mxu1 %vm260_vm1, %v387_v39  ;;  %v1718_v39 = vperm.slane %v1645_v51, 2 }
 0x110   :  { %1306 = vmatmul.msk.f32.gmra.mxu1 %vm260_vm1, %v388_v41 }
 0x118   :  { %1307 = vmatmul.msk.f32.gmra.mxu1 %vm260_vm1, %v389_v44 }
 0x11d   :  { %v465_v46 = vpop.f32.mrf.mxu1 }
 0x11e   :  { %v466_v47 = vadd.f32 %v465_v46, %v1683_v45 }
 0x120   :  { %v513_v48 = vmax.f32 %v466_v47, 0.0 }
 0x122   :  { %1308 = vmatmul.msk.f32.vlgmr.msrb.gmra.mxu2 %vm260_vm1, %v513_v48 }
 0x125   :  { %v468_v49 = vpop.f32.mrf.mxu1 }
 0x126   :  { %v469_v50 = vadd.f32 %v468_v49, %v1683_v45 }
 0x128   :  { %v514_v53 = vmax.f32 %v469_v50, 0.0 }
 0x12a   :  { %1309 = vmatmul.msk.f32.gmra.mxu2 %vm260_vm1, %v514_v53 }
 0x12d   :  { %v471_v54 = vpop.f32.mrf.mxu1 }
 0x12e   :  { %v472_v52 = vadd.f32 %v471_v54, %v1683_v45 }
 0x130   :  { %v515_v55 = vmax.f32 %v472_v52, 0.0 }
 0x132   :  { %1310 = vmatmul.msk.f32.gmra.mxu2 %vm260_vm1, %v515_v55 }
 0x135   :  { %v474_v56 = vpop.f32.mrf.mxu1 }
 0x136   :  { %v475_v57 = vadd.f32 %v474_v56, %v1683_v45 }
 0x138   :  { %v516_v58 = vmax.f32 %v475_v57, 0.0 }
 0x13a   :  { %1311 = vmatmul.msk.f32.gmra.mxu2 %vm260_vm1, %v516_v58 }
 0x13d   :  { %v477_v59 = vpop.f32.mrf.mxu1 }
 0x13e   :  { %v478_v60 = vadd.f32 %v477_v59, %v1683_v45 }
 0x140   :  { %v517_v61 = vmax.f32 %v478_v60, 0.0 }
 0x142   :  { %1312 = vmatmul.msk.f32.gmra.mxu2 %vm260_vm1, %v517_v61 }
 0x145   :  { %v480_v62 = vpop.f32.mrf.mxu1 }
 0x146   :  { %v481_v63 = vadd.f32 %v480_v62, %v1683_v45  ;;  %v815_v62 = vld [vmem:[#allocation7 + $0x138] sm:$0xff] }
 0x147   :  { %873 = vmatpush.msrb.mxu0 %v815_v62 }
 0x148   :  { %v518_v0 = vmax.f32 %v481_v63, 0.0 }
 0x14a   :  { %1313 = vmatmul.msk.f32.gmra.mxu2 %vm260_vm1, %v518_v0 }
 0x14d   :  { %v483_v1 = vpop.f32.mrf.mxu1 }
 0x14e   :  { %v484_v2 = vadd.f32 %v483_v1, %v1683_v45 }
 0x150   :  { %v519_v3 = vmax.f32 %v484_v2, 0.0  ;;  %v814_v2 = vld [vmem:[#allocation7 + $0x130] sm:$0xff] }
 0x151   :  { %874 = vmatpush.msrb.mxu0 %v814_v2 }
 0x152   :  { %1314 = vmatmul.msk.f32.gmra.mxu2 %vm260_vm1, %v519_v3 }
 0x155   :  { %v486_v4 = vpop.f32.mrf.mxu1 }
 0x156   :  { %v487_v5 = vadd.f32 %v486_v4, %v1683_v45 }
 0x158   :  { %v520_v6 = vmax.f32 %v487_v5, 0.0 }
 0x15a   :  { %1315 = vmatmul.msk.f32.gmra.mxu2 %vm260_vm1, %v520_v6  ;;  %v813_v6 = vld [vmem:[#allocation7 + $0x128] sm:$0xff] }
 0x15b   :  { %875 = vmatpush.msrb.mxu0 %v813_v6 }
 0x15d   :  { %v489_v7 = vpop.f32.mrf.mxu1  ;;  %876 = vmatpush.msrb.mxu0 %v812_v10 }
 0x15e   :  { %v490_v8 = vadd.f32 %v489_v7, %v1683_v45 }
 0x15f   :  { %877 = vmatpush.msrb.mxu0 %v811_v14 }
 0x160   :  { %v521_v9 = vmax.f32 %v490_v8, 0.0 }
 0x162   :  { %1316 = vmatmul.msk.f32.gmra.mxu2 %vm260_vm1, %v521_v9 }
 0x165   :  { %v492_v11 = vpop.f32.mrf.mxu1 }
 0x166   :  { %v493_v12 = vadd.f32 %v492_v11, %v1683_v45 }
 0x168   :  { %v522_v13 = vmax.f32 %v493_v12, 0.0 }
 0x16a   :  { %1317 = vmatmul.msk.f32.gmra.mxu2 %vm260_vm1, %v522_v13 }
 0x16d   :  { %v495_v16 = vpop.f32.mrf.mxu1 }
 0x16e   :  { %v496_v17 = vadd.f32 %v495_v16, %v1683_v45 }
 0x170   :  { %v523_v18 = vmax.f32 %v496_v17, 0.0 }
 0x172   :  { %1318 = vmatmul.msk.f32.gmra.mxu2 %vm260_vm1, %v523_v18  ;;  %v810_v18 = vld [vmem:[#allocation7 + $0x110] sm:$0xff] }
 0x173   :  { %878 = vmatpush.msrb.mxu0 %v810_v18 }
 0x175   :  { %v498_v20 = vpop.f32.mrf.mxu1  ;;  %879 = vmatpush.msrb.mxu0 %v809_v19 }
 0x176   :  { %v499_v21 = vadd.f32 %v498_v20, %v1683_v45  ;;  %v808_v20 = vld [vmem:[#allocation7 + $0x100] sm:$0xff] }
 0x177   :  { %880 = vmatpush.msrb.mxu0 %v808_v20  ;;  %v994_v20 = vld [vmem:[%s1867_s2 + $0x30] sm:$0xff] }
 0x178   :  { %v524_v22 = vmax.f32 %v499_v21, 0.0 }
 0x17a   :  { %1319 = vmatmul.msk.f32.gmra.mxu2 %vm260_vm1, %v524_v22 }
 0x17d   :  { %v501_v26 = vpop.f32.mrf.mxu1 }
 0x17e   :  { %v502_v27 = vadd.f32 %v501_v26, %v1683_v45 }
 0x180   :  { %v525_v28 = vmax.f32 %v502_v27, 0.0 }
 0x182   :  { %1320 = vmatmul.msk.f32.gmra.mxu2 %vm260_vm1, %v525_v28 }
 0x185   :  { %v504_v29 = vpop.f32.mrf.mxu1 }
 0x186   :  { %v505_v30 = vadd.f32 %v504_v29, %v1683_v45 }
 0x188   :  { %v526_v31 = vmax.f32 %v505_v30, 0.0 }
 0x18a   :  { %1321 = vmatmul.msk.f32.gmra.mxu2 %vm260_vm1, %v526_v31 }
 0x18d   :  { %v507_v33 = vpop.f32.mrf.mxu1 }
 0x18e   :  { %v508_v34 = vadd.f32 %v507_v33, %v1683_v45  ;;  %v1753_v33 = vperm.slane %v1645_v51, 3 }
 0x190   :  { %v527_v35 = vmax.f32 %v508_v34, 0.0 }
 0x192   :  { %1322 = vmatmul.msk.f32.gmra.mxu2 %vm260_vm1, %v527_v35 }
 0x195   :  { %v510_v36 = vpop.f32.mrf.mxu1 }
 0x196   :  { %v511_v37 = vadd.f32 %v510_v36, %v1683_v45 }
 0x198   :  { %v528_v38 = vmax.f32 %v511_v37, 0.0 }
 0x19a   :  { %1323 = vmatmul.msk.f32.gmra.mxu2 %vm260_vm1, %v528_v38 }
 0x1a5   :  { %v604_v40 = vpop.f32.mrf.mxu2 }
 0x1a6   :  { %v605_v41 = vadd.f32 %v604_v40, %v1718_v39 }
 0x1a8   :  { %v652_v42 = vmax.f32 %v605_v41, 0.0 }
 0x1aa   :  { %1324 = vmatmul.msk.f32.vlgmr.msrb.gmra.mxu3 %vm260_vm1, %v652_v42 }
 0x1ad   :  { %v607_v43 = vpop.f32.mrf.mxu2 }
 0x1ae   :  { %v608_v44 = vadd.f32 %v607_v43, %v1718_v39 }
 0x1b0   :  { %v653_v46 = vmax.f32 %v608_v44, 0.0 }
 0x1b2   :  { %1325 = vmatmul.msk.f32.gmra.mxu3 %vm260_vm1, %v653_v46 }
 0x1b5   :  { %v610_v47 = vpop.f32.mrf.mxu2 }
 0x1b6   :  { %v611_v45 = vadd.f32 %v610_v47, %v1718_v39 }
 0x1b8   :  { %v654_v48 = vmax.f32 %v611_v45, 0.0 }
 0x1ba   :  { %1326 = vmatmul.msk.f32.gmra.mxu3 %vm260_vm1, %v654_v48 }
 0x1bd   :  { %v613_v49 = vpop.f32.mrf.mxu2 }
 0x1be   :  { %v614_v50 = vadd.f32 %v613_v49, %v1718_v39 }
 0x1c0   :  { %v655_v53 = vmax.f32 %v614_v50, 0.0 }
 0x1c2   :  { %1327 = vmatmul.msk.f32.gmra.mxu3 %vm260_vm1, %v655_v53 }
 0x1c5   :  { %v616_v54 = vpop.f32.mrf.mxu2 }
 0x1c6   :  { %v617_v52 = vadd.f32 %v616_v54, %v1718_v39 }
 0x1c8   :  { %v656_v55 = vmax.f32 %v617_v52, 0.0 }
 0x1ca   :  { %1328 = vmatmul.msk.f32.gmra.mxu3 %vm260_vm1, %v656_v55 }
 0x1cd   :  { %v619_v56 = vpop.f32.mrf.mxu2 }
 0x1ce   :  { %v620_v57 = vadd.f32 %v619_v56, %v1718_v39 }
 0x1d0   :  { %v657_v58 = vmax.f32 %v620_v57, 0.0 }
 0x1d2   :  { %1329 = vmatmul.msk.f32.gmra.mxu3 %vm260_vm1, %v657_v58 }
 0x1d5   :  { %v622_v59 = vpop.f32.mrf.mxu2 }
 0x1d6   :  { %v623_v60 = vadd.f32 %v622_v59, %v1718_v39 }
 0x1d8   :  { %v658_v61 = vmax.f32 %v623_v60, 0.0 }
 0x1da   :  { %1330 = vmatmul.msk.f32.gmra.mxu3 %vm260_vm1, %v658_v61 }
 0x1dd   :  { %v625_v63 = vpop.f32.mrf.mxu2 }
 0x1de   :  { %v626_v0 = vadd.f32 %v625_v63, %v1718_v39 }
 0x1e0   :  { %v659_v1 = vmax.f32 %v626_v0, 0.0 }
 0x1e2   :  { %1331 = vmatmul.msk.f32.gmra.mxu3 %vm260_vm1, %v659_v1 }
 0x1e5   :  { %v628_v3 = vpop.f32.mrf.mxu2 }
 0x1e6   :  { %v629_v4 = vadd.f32 %v628_v3, %v1718_v39 }
 0x1e8   :  { %v660_v5 = vmax.f32 %v629_v4, 0.0 }
 0x1ea   :  { %1332 = vmatmul.msk.f32.gmra.mxu3 %vm260_vm1, %v660_v5 }
 0x1ed   :  { %v631_v7 = vpop.f32.mrf.mxu2 }
 0x1ee   :  { %v632_v8 = vadd.f32 %v631_v7, %v1718_v39 }
 0x1f0   :  { %v661_v9 = vmax.f32 %v632_v8, 0.0 }
 0x1f2   :  { %1333 = vmatmul.msk.f32.gmra.mxu3 %vm260_vm1, %v661_v9 }
 0x1f5   :  { %v634_v11 = vpop.f32.mrf.mxu2 }
 0x1f6   :  { %v635_v12 = vadd.f32 %v634_v11, %v1718_v39 }
 0x1f8   :  { %v662_v13 = vmax.f32 %v635_v12, 0.0 }
 0x1fa   :  { %1334 = vmatmul.msk.f32.gmra.mxu3 %vm260_vm1, %v662_v13  ;;  %v995_v13 = vld [vmem:[%s1867_s2 + $0x38] sm:$0xff] }
 0x1fb   :  { %1012 = vmatpush.msrb.mxu1 %v995_v13 }
 0x1fd   :  { %v637_v15 = vpop.f32.mrf.mxu2  ;;  %1013 = vmatpush.msrb.mxu1 %v994_v20 }
 0x1fe   :  { %v638_v16 = vadd.f32 %v637_v15, %v1718_v39 }
 0x200   :  { %v663_v17 = vmax.f32 %v638_v16, 0.0 }
 0x202   :  { %1335 = vmatmul.msk.f32.gmra.mxu3 %vm260_vm1, %v663_v17 }
 0x205   :  { %v640_v21 = vpop.f32.mrf.mxu2 }
 0x206   :  { %v641_v22 = vadd.f32 %v640_v21, %v1718_v39 }
 0x208   :  { %v664_v23 = vmax.f32 %v641_v22, 0.0 }
 0x20a   :  { %1336 = vmatmul.msk.f32.gmra.mxu3 %vm260_vm1, %v664_v23  ;;  %v1794_v23 = vperm.slane %v1645_v51, 4 }
 0x20d   :  { %v643_v24 = vpop.f32.mrf.mxu2 }
 0x20e   :  { %v644_v25 = vadd.f32 %v643_v24, %v1718_v39 }
 0x210   :  { %v665_v26 = vmax.f32 %v644_v25, 0.0  ;;  %v993_v25 = vld [vmem:[%s1867_s2 + $0x28] sm:$0xff] }
 0x211   :  { %1014 = vmatpush.msrb.mxu1 %v993_v25 }
 0x212   :  { %1337 = vmatmul.msk.f32.gmra.mxu3 %vm260_vm1, %v665_v26 }
 0x215   :  { %v646_v27 = vpop.f32.mrf.mxu2 }
 0x216   :  { %v647_v28 = vadd.f32 %v646_v27, %v1718_v39 }
 0x218   :  { %v666_v29 = vmax.f32 %v647_v28, 0.0 }
 0x21a   :  { %1338 = vmatmul.msk.f32.gmra.mxu3 %vm260_vm1, %v666_v29 }
 0x21d   :  { %v649_v30 = vpop.f32.mrf.mxu2 }
 0x21e   :  { %v650_v31 = vadd.f32 %v649_v30, %v1718_v39 }
 0x220   :  { %v667_v32 = vmax.f32 %v650_v31, 0.0 }
 0x222   :  { %1339 = vmatmul.msk.f32.gmra.mxu3 %vm260_vm1, %v667_v32 }
 0x22d   :  { %v743_v34 = vpop.f32.mrf.mxu3 }
 0x22e   :  { %v744_v35 = vadd.f32 %v743_v34, %v1753_v33 }
 0x230   :  { %v791_v36 = vmax.f32 %v744_v35, 0.0 }
 0x232   :  { %1340 = vmatmul.msk.f32.vlgmr.msrb.gmra.mxu0 %vm260_vm1, %v791_v36 }
 0x235   :  { %v746_v37 = vpop.f32.mrf.mxu3 }
 0x236   :  { %v747_v38 = vadd.f32 %v746_v37, %v1753_v33 }
 0x238   :  { %v792_v40 = vmax.f32 %v747_v38, 0.0 }
 0x23a   :  { %1341 = vmatmul.msk.f32.gmra.mxu0 %vm260_vm1, %v792_v40 }
 0x23d   :  { %v749_v41 = vpop.f32.mrf.mxu3 }
 0x23e   :  { %v750_v39 = vadd.f32 %v749_v41, %v1753_v33 }
 0x240   :  { %v793_v42 = vmax.f32 %v750_v39, 0.0 }
 0x242   :  { %1342 = vmatmul.msk.f32.gmra.mxu0 %vm260_vm1, %v793_v42 }
 0x245   :  { %v752_v43 = vpop.f32.mrf.mxu3 }
 0x246   :  { %v753_v44 = vadd.f32 %v752_v43, %v1753_v33 }
 0x248   :  { %v794_v46 = vmax.f32 %v753_v44, 0.0 }
 0x24a   :  { %1343 = vmatmul.msk.f32.gmra.mxu0 %vm260_vm1, %v794_v46 }
 0x24d   :  { %v755_v47 = vpop.f32.mrf.mxu3 }
 0x24e   :  { %v756_v45 = vadd.f32 %v755_v47, %v1753_v33  ;;  %v992_v47 = vld [vmem:[%s1867_s2 + $0x20] sm:$0xff] }
 0x24f   :  { %1015 = vmatpush.msrb.mxu1 %v992_v47 }
 0x250   :  { %v795_v48 = vmax.f32 %v756_v45, 0.0 }
 0x252   :  { %1344 = vmatmul.msk.f32.gmra.mxu0 %vm260_vm1, %v795_v48 }
 0x255   :  { %v758_v49 = vpop.f32.mrf.mxu3 }
 0x256   :  { %v759_v50 = vadd.f32 %v758_v49, %v1753_v33 }
 0x258   :  { %v796_v53 = vmax.f32 %v759_v50, 0.0 }
 0x25a   :  { %1345 = vmatmul.msk.f32.gmra.mxu0 %vm260_vm1, %v796_v53  ;;  %v991_v53 = vld [vmem:[%s1867_s2 + $0x18] sm:$0xff] }
 0x25b   :  { %1016 = vmatpush.msrb.mxu1 %v991_v53 }
 0x25d   :  { %v761_v54 = vpop.f32.mrf.mxu3 }
 0x25e   :  { %v762_v52 = vadd.f32 %v761_v54, %v1753_v33 }
 0x260   :  { %v797_v55 = vmax.f32 %v762_v52, 0.0 }
 0x262   :  { %1346 = vmatmul.msk.f32.gmra.mxu0 %vm260_vm1, %v797_v55 }
 0x265   :  { %v764_v56 = vpop.f32.mrf.mxu3 }
 0x266   :  { %v765_v57 = vadd.f32 %v764_v56, %v1753_v33 }
 0x268   :  { %v798_v58 = vmax.f32 %v765_v57, 0.0 }
 0x26a   :  { %1347 = vmatmul.msk.f32.gmra.mxu0 %vm260_vm1, %v798_v58 }
 0x26d   :  { %v767_v59 = vpop.f32.mrf.mxu3 }
 0x26e   :  { %v768_v60 = vadd.f32 %v767_v59, %v1753_v33 }
 0x270   :  { %v799_v61 = vmax.f32 %v768_v60, 0.0 }
 0x272   :  { %1348 = vmatmul.msk.f32.gmra.mxu0 %vm260_vm1, %v799_v61 }
 0x275   :  { %v770_v62 = vpop.f32.mrf.mxu3 }
 0x276   :  { %v771_v63 = vadd.f32 %v770_v62, %v1753_v33 }
 0x278   :  { %v800_v0 = vmax.f32 %v771_v63, 0.0 }
 0x27a   :  { %1349 = vmatmul.msk.f32.gmra.mxu0 %vm260_vm1, %v800_v0  ;;  %v990_v0 = vld [vmem:[%s1867_s2 + $0x10] sm:$0xff] }
 0x27b   :  { %1017 = vmatpush.msrb.mxu1 %v990_v0 }
 0x27d   :  { %v773_v1 = vpop.f32.mrf.mxu3 }
 0x27e   :  { %v774_v2 = vadd.f32 %v773_v1, %v1753_v33 }
 0x280   :  { %v801_v3 = vmax.f32 %v774_v2, 0.0 }
 0x282   :  { %1350 = vmatmul.msk.f32.gmra.mxu0 %vm260_vm1, %v801_v3 }
 0x285   :  { %v776_v4 = vpop.f32.mrf.mxu3 }
 0x286   :  { %v777_v5 = vadd.f32 %v776_v4, %v1753_v33  ;;  %v989_v4 = vld [vmem:[%s1867_s2 + $0x8] sm:$0xff] }
 0x287   :  { %1018 = vmatpush.msrb.mxu1 %v989_v4  ;;  %v1072_v4 = vld [vmem:[#allocation7 + $0x178] sm:$0xff] }
 0x288   :  { %v802_v6 = vmax.f32 %v777_v5, 0.0 }
 0x28a   :  { %1351 = vmatmul.msk.f32.gmra.mxu0 %vm260_vm1, %v802_v6 }
 0x28d   :  { %v779_v7 = vpop.f32.mrf.mxu3 }
 0x28e   :  { %v780_v8 = vadd.f32 %v779_v7, %v1753_v33 }
 0x290   :  { %v803_v9 = vmax.f32 %v780_v8, 0.0  ;;  %v988_v8 = vld [vmem:[%s1867_s2] sm:$0xff] }
 0x291   :  { %1019 = vmatpush.msrb.mxu1 %v988_v8  ;;  %v1068_v8 = vld [vmem:[#allocation7 + $0x158] sm:$0xff] }
 0x292   :  { %1352 = vmatmul.msk.f32.gmra.mxu0 %vm260_vm1, %v803_v9 }
 0x293   :  { %1085 = vmatpush.msra.mxu1 %v1072_v4 }
 0x295   :  { %v782_v10 = vpop.f32.mrf.mxu3 }
 0x296   :  { %v783_v11 = vadd.f32 %v782_v10, %v1753_v33 }
 0x298   :  { %v804_v12 = vmax.f32 %v783_v11, 0.0 }
 0x29a   :  { %1353 = vmatmul.msk.f32.gmra.mxu0 %vm260_vm1, %v804_v12  ;;  %v1028_v12 = vld [vmem:[%s1865_s0] sm:$0x3] }
 0x29b   :  { %1030 = vrot.lane.b32.xlu0 %v1028_v12, %s1476_s13  ;;  %v1066_v12 = vld [vmem:[#allocation7 + $0x148] sm:$0xff] }
 0x29d   :  { %v785_v14 = vpop.f32.mrf.mxu3 }
 0x29e   :  { %v786_v15 = vadd.f32 %v785_v14, %v1753_v33 }
 0x2a0   :  { %v805_v16 = vmax.f32 %v786_v15, 0.0 }
 0x2a2   :  { %1354 = vmatmul.msk.f32.gmra.mxu0 %vm260_vm1, %v805_v16 }
 0x2a5   :  { %v788_v17 = vpop.f32.mrf.mxu3 }
 0x2a6   :  { %v789_v18 = vadd.f32 %v788_v17, %v1753_v33 }
 0x2a8   :  { %v806_v19 = vmax.f32 %v789_v18, 0.0 }
 0x2aa   :  { %1355 = vmatmul.msk.f32.gmra.mxu0 %vm260_vm1, %v806_v19 }
 0x2af   :  { %v882_v21 = vpop.f32.mrf.mxu0 }
 0x2b0   :  { %v883_v24 = vadd.f32 %v882_v21, %v1794_v23 }
 0x2b2   :  { %v930_v27 = vmax.f32 %v883_v24, 0.0 }
 0x2b4   :  { %v946_v30 = vsel %vm260_vm1, %v930_v27, -inf }
 0x2b7   :  { %v885_v22 = vpop.f32.mrf.mxu0 }
 0x2b8   :  { %v886_v31 = vadd.f32 %v885_v22, %v1794_v23 }
 0x2ba   :  { %v931_v35 = vmax.f32 %v886_v31, 0.0 }
 0x2bc   :  { %v947_v38 = vsel %vm260_vm1, %v931_v35, -inf }
 0x2bf   :  { %v888_v26 = vpop.f32.mrf.mxu0 }
 0x2c0   :  { %v889_v28 = vadd.f32 %v888_v26, %v1794_v23 }
 0x2c2   :  { %v932_v29 = vmax.f32 %v889_v28, 0.0 }
 0x2c4   :  { %v948_v32 = vsel %vm260_vm1, %v932_v29, -inf }
 0x2c5   :  { %v949_v33 = vmax.f32 %v946_v30, %v948_v32 }
 0x2c7   :  { %v891_v34 = vpop.f32.mrf.mxu0 }
 0x2c8   :  { %v892_v36 = vadd.f32 %v891_v34, %v1794_v23 }
 0x2ca   :  { %v933_v37 = vmax.f32 %v892_v36, 0.0 }
 0x2cc   :  { %v950_v40 = vsel %vm260_vm1, %v933_v37, -inf }
 0x2cd   :  { %v951_v41 = vmax.f32 %v947_v38, %v950_v40 }
 0x2cf   :  { %v894_v39 = vpop.f32.mrf.mxu0 }
 0x2d0   :  { %v895_v42 = vadd.f32 %v894_v39, %v1794_v23 }
 0x2d2   :  { %v934_v43 = vmax.f32 %v895_v42, 0.0 }
 0x2d4   :  { %v952_v44 = vsel %vm260_vm1, %v934_v43, -inf }
 0x2d5   :  { %v953_v46 = vmax.f32 %v949_v33, %v952_v44 }
 0x2d7   :  { %v897_v45 = vpop.f32.mrf.mxu0 }
 0x2d8   :  { %v898_v48 = vadd.f32 %v897_v45, %v1794_v23 }
 0x2da   :  { %v935_v49 = vmax.f32 %v898_v48, 0.0 }
 0x2dc   :  { %v954_v50 = vsel %vm260_vm1, %v935_v49, -inf }
 0x2dd   :  { %v955_v54 = vmax.f32 %v951_v41, %v954_v50 }
 0x2df   :  { %v900_v52 = vpop.f32.mrf.mxu0 }
 0x2e0   :  { %v901_v55 = vadd.f32 %v900_v52, %v1794_v23 }
 0x2e2   :  { %v936_v56 = vmax.f32 %v901_v55, 0.0 }
 0x2e4   :  { %v956_v57 = vsel %vm260_vm1, %v936_v56, -inf }
 0x2e5   :  { %v957_v58 = vmax.f32 %v953_v46, %v956_v57 }
 0x2e7   :  { %v903_v59 = vpop.f32.mrf.mxu0 }
 0x2e8   :  { %v904_v60 = vadd.f32 %v903_v59, %v1794_v23  ;;  %v233_v59 = vld [vmem:[#allocation7 + $0x1c8] sm:$0xff] }
 0x2ea   :  { %v937_v61 = vmax.f32 %v904_v60, 0.0  ;;  %v1388_v60 = vld [vmem:[%s1867_s2 + $0x40] ss:$0 sm:$0xff]  ;;  %s1478_s2 = smov [#allocation12]  }
 0x2ec   :  { %v958_v62 = vsel %vm260_vm1, %v937_v61, -inf }
 0x2ed   :  { %v959_v63 = vmax.f32 %v955_v54, %v958_v62 }
 0x2ef   :  { %v960_v1 = vmax.f32 %v957_v58, %v959_v63  ;;  %v906_v2 = vpop.f32.mrf.mxu0  ;;  %v234_v58 = vld [vmem:[#allocation7 + $0x1d0] sm:$0xff] }
 0x2f0   :  { %v907_v13 = vadd.f32 %v906_v2, %v1794_v23  ;;  %1058 = vmatpush.msra.mxu2 %v234_v58  ;;  %v1157_v58 = vld [vmem:[#allocation10 + $0xc0] ss:$8 sm:$0x7] }
 0x2f1   :  { %v961_v29 = vrot.slane %v960_v1, 4 }
 0x2f2   :  { %v938_v21 = vmax.f32 %v907_v13, 0.0  ;;  %1059 = vmatpush.msra.mxu2 %v233_v59  ;;  %v1065_v13 = vld [vmem:[#allocation7 + $0x140] sm:$0xff]  ;;  %v1161_v59 = vperm.slane %v1157_v58, 2 }
 0x2f3   :  { %v962_v41 = vmax.f32 %v960_v1, %v961_v29  ;;  %v1153_v29 = vld [vmem:[#allocation10 + $0xa8] sm:$0xff] }
 0x2f4   :  { %v967_v30 = vsel %vm260_vm1, %v938_v21, -inf  ;;  %1176 = vmatpush.msrb.mxu2 %v1153_v29 }
 0x2f5   :  { %v963_v47 = vrot.slane %v962_v41, 2 }
 0x2f7   :  { %v909_v3 = vpop.f32.mrf.mxu0  ;;  %v964_v50 = vmax.f32 %v962_v41, %v963_v47  ;;  %v1143_v41 = vld [vmem:[#allocation10 + $0x58] sm:$0xff] }
 0x2f8   :  { %v910_v15 = vadd.f32 %v909_v3, %v1794_v23 }
 0x2f9   :  { %v965_v54 = vrot.slane %v964_v50, 1 }
 0x2fa   :  { %v939_v22 = vmax.f32 %v910_v15, 0.0  ;;  %v1105_v15 = vld [vmem:[#allocation7 + $0x1b0] sm:$0xff] }
 0x2fb   :  { %v966_v55 = vmax.f32 %v964_v50, %v965_v54  ;;  %v1135_v50 = vld [vmem:[#allocation10 + $0x18] sm:$0xff]  ;;  %v1132_v54 = vld [vmem:[#allocation10] sm:$0xff] }
 0x2fc   :  { %v968_v32 = vsel %vm260_vm1, %v939_v22, -inf  ;;  %v1101_v22 = vld [vmem:[#allocation7 + $0x190] sm:$0xff] }
 0x2ff   :  { %v912_v5 = vpop.f32.mrf.mxu0 }
 0x300   :  { %v913_v10 = vadd.f32 %v912_v5, %v1794_v23  ;;  %v1071_v5 = vld [vmem:[#allocation7 + $0x170] sm:$0xff] }
 0x301   :  { %1086 = vmatpush.msra.mxu1 %v1071_v5 }
 0x302   :  { %v940_v18 = vmax.f32 %v913_v10, 0.0 }
 0x304   :  { %v969_v26 = vsel %vm260_vm1, %v940_v18, -inf  ;;  %v1102_v18 = vld [vmem:[#allocation7 + $0x198] sm:$0xff] }
 0x305   :  { %v970_v36 = vmax.f32 %v967_v30, %v969_v26  ;;  %v1154_v26 = vld [vmem:[#allocation10 + $0xb0] sm:$0xff]  ;;  %v1155_v30 = vld [vmem:[#allocation10 + $0xb8] sm:$0xff] }
 0x306   :  { %1196 = vmatpush.msra.mxu3 %v1154_v26 }
 0x307   :  { %v915_v6 = vpop.f32.mrf.mxu0 }
 0x308   :  { %v916_v11 = vadd.f32 %v915_v6, %v1794_v23  ;;  %v1070_v6 = vld [vmem:[#allocation7 + $0x168] sm:$0xff] }
 0x309   :  { %1087 = vmatpush.msra.mxu1 %v1070_v6 }
 0x30a   :  { %v941_v19 = vmax.f32 %v916_v11, 0.0 }
 0x30c   :  { %v971_v27 = vsel %vm260_vm1, %v941_v19, -inf  ;;  %v1039_v19 = vperm.slane %v1645_v51, 5  ;;  %v1152_v51 = vld [vmem:[#allocation10 + $0xa0] sm:$0xff] }
 0x30d   :  { %v972_v37 = vmax.f32 %v968_v32, %v971_v27  ;;  %v1031_v1 = vpop.permute.xlu0 %1030  ;;  %v1151_v27 = vld [vmem:[#allocation10 + $0x98] sm:$0xff]  ;;  %v1145_v32 = vld [vmem:[#allocation10 + $0x68] sm:$0xff] }
 0x30e   :  { %1197 = vmatpush.msra.mxu3 %v1151_v27 }
 0x30f   :  { %v918_v7 = vpop.f32.mrf.mxu0 }
 0x310   :  { %v919_v16 = vadd.f32 %v918_v7, %v1794_v23  ;;  %v1069_v7 = vld [vmem:[#allocation7 + $0x160] sm:$0xff] }
 0x311   :  { %1088 = vmatpush.msra.mxu1 %v1069_v7 }
 0x312   :  { %v942_v24 = vmax.f32 %v919_v16, 0.0  ;;  %v1104_v16 = vld [vmem:[#allocation7 + $0x1a8] sm:$0xff] }
 0x313   :  { %1089 = vmatpush.msra.mxu1 %v1068_v8 }
 0x314   :  { %v973_v33 = vsel %vm260_vm1, %v942_v24, -inf  ;;  %v1100_v24 = vld [vmem:[#allocation7 + $0x188] sm:$0xff] }
 0x315   :  { %v974_v39 = vmax.f32 %v970_v36, %v973_v33  ;;  %v1147_v33 = vld [vmem:[#allocation10 + $0x78] sm:$0xff]  ;;  %v1144_v36 = vld [vmem:[#allocation10 + $0x60] sm:$0xff] }
 0x317   :  { %v921_v9 = vpop.f32.mrf.mxu0 }
 0x318   :  { %v922_v17 = vadd.f32 %v921_v9, %v1794_v23  ;;  %v1067_v9 = vld [vmem:[#allocation7 + $0x150] sm:$0xff] }
 0x319   :  { %1090 = vmatpush.msra.mxu1 %v1067_v9 }
 0x31a   :  { %v943_v25 = vmax.f32 %v922_v17, 0.0  ;;  %v1103_v17 = vld [vmem:[#allocation7 + $0x1a0] sm:$0xff] }
 0x31b   :  { %1091 = vmatpush.msra.mxu1 %v1066_v12 }
 0x31c   :  { %v975_v34 = vsel %vm260_vm1, %v943_v25, -inf  ;;  %v1099_v25 = vld [vmem:[#allocation7 + $0x180] sm:$0xff] }
 0x31d   :  { %v976_v42 = vmax.f32 %v972_v37, %v975_v34  ;;  %1092 = vmatpush.msra.mxu1 %v1065_v13  ;;  %v1149_v34 = vld [vmem:[#allocation10 + $0x88] sm:$0xff]  ;;  %v1146_v37 = vld [vmem:[#allocation10 + $0x70] sm:$0xff] }
 0x31f   :  { %v924_v14 = vpop.f32.mrf.mxu0 }
 0x320   :  { %v925_v20 = vadd.f32 %v924_v14, %v1794_v23  ;;  %v1106_v14 = vld [vmem:[#allocation7 + $0x1b8] sm:$0xff] }
 0x322   :  { %v944_v28 = vmax.f32 %v925_v20, 0.0 }
 0x324   :  { %v977_v38 = vsel %vm260_vm1, %v944_v28, -inf  ;;  %v1148_v28 = vld [vmem:[#allocation10 + $0x80] sm:$0xff] }
 0x325   :  { %v978_v44 = vmax.f32 %v974_v39, %v977_v38  ;;  %1198 = vmatpush.msra.mxu3 %v1148_v28  ;;  %v1139_v38 = vld [vmem:[#allocation10 + $0x38] sm:$0xff]  ;;  %v1136_v39 = vld [vmem:[#allocation10 + $0x20] sm:$0xff] }
 0x327   :  { %v927_v31 = vpop.f32.mrf.mxu0  ;;  %1199 = vmatpush.msra.mxu3 %v1145_v32 }
 0x328   :  { %v928_v35 = vadd.f32 %v927_v31, %v1794_v23  ;;  %v1150_v31 = vld [vmem:[#allocation10 + $0x90] sm:$0xff] }
 0x329   :  { %1177 = vmatpush.msrb.mxu2 %v1150_v31 }
 0x32a   :  { %v945_v40 = vmax.f32 %v928_v35, 0.0  ;;  %v1142_v35 = vld [vmem:[#allocation10 + $0x50] sm:$0xff] }
 0x32b   :  { %1178 = vmatpush.msrb.mxu2 %v1147_v33  ;;  %1200 = vmatpush.msra.mxu3 %v1142_v35 }
 0x32c   :  { %v979_v43 = vsel %vm260_vm1, %v945_v40, -inf  ;;  %v1141_v40 = vld [vmem:[#allocation10 + $0x48] sm:$0xff] }
 0x32d   :  { %v980_v46 = vmax.f32 %v976_v42, %v979_v43  ;;  %1179 = vmatpush.msrb.mxu2 %v1144_v36  ;;  %1201 = vmatpush.msra.mxu3 %v1139_v38  ;;  %v1133_v42 = vld [vmem:[#allocation10 + $0x8] sm:$0xff]  ;;  %v1391_v43 = vld [vmem:[#allocation7 + $0x1c0] sm:$0xff] }
 0x32f   :  { %v981_v45 = vmax.f32 %v978_v44, %v980_v46  ;;  %1180 = vmatpush.msrb.mxu2 %v1141_v40  ;;  %1202 = vmatpush.msra.mxu3 %v1136_v39  ;;  %v1073_v44 = vperm.slane %v1391_v43, 6 }
 0x331   :  { %v982_v48 = vrot.slane %v981_v45, 4  ;;  %1203 = vmatpush.msra.mxu3 %v1133_v42 }
 0x333   :  { %v983_v49 = vmax.f32 %v981_v45, %v982_v48  ;;  %v1138_v48 = vld [vmem:[#allocation10 + $0x30] sm:$0xff] }
 0x334   :  { %1181 = vmatpush.msrb.mxu2 %v1138_v48 }
 0x335   :  { %v984_v53 = vrot.slane %v983_v49, 2 }
 0x336   :  { %1182 = vmatpush.msrb.mxu2 %v1135_v50 }
 0x337   :  { %v985_v23 = vmax.f32 %v983_v49, %v984_v53  ;;  %v1140_v49 = vld [vmem:[#allocation10 + $0x40] sm:$0xff]  ;;  %v1137_v53 = vld [vmem:[#allocation10 + $0x28] sm:$0xff] }
 0x338   :  { %1183 = vmatpush.msrb.mxu2 %v1132_v54 }
 0x339   :  { %v986_v52 = vrot.slane %v985_v23, 1 }
 0x33b   :  { %v987_v56 = vmax.f32 %v985_v23, %v986_v52  ;;  %v1134_v23 = vld [vmem:[#allocation10 + $0x10] sm:$0xff]  ;;  %v1107_v52 = vperm.slane %v1391_v43, 7 }
 0x33d   :  { %v1001_v57 = vsel %vm1000_vm2, %v987_v56, %v966_v55 }
 0x33e   :  { %1356 = vmatmul.msk.f32.vlgmr.msrb.gmra.mxu1 %vm260_vm1, %v1001_v57 }
 0x33f   :  { %1119 = vmatpush.msrb.mxu1 %v1106_v14 }
 0x341   :  { %1120 = vmatpush.msrb.mxu1 %v1105_v15 }
 0x343   :  { %1121 = vmatpush.msrb.mxu1 %v1104_v16 }
 0x345   :  { %1122 = vmatpush.msrb.mxu1 %v1103_v17 }
 0x347   :  { %1123 = vmatpush.msrb.mxu1 %v1102_v18 }
 0x349   :  { %1124 = vmatpush.msrb.mxu1 %v1101_v22 }
 0x34b   :  { %1125 = vmatpush.msrb.mxu1 %v1100_v24 }
 0x34d   :  { %1126 = vmatpush.msrb.mxu1 %v1099_v25 }
 0x3bb   :  { %v1021_v61 = vpop.f32.mrf.mxu1 }
 0x3bc   :  { %v1022_v62 = vadd.f32 %v1388_v60, %v1021_v61  ;;  %v1160_v61 = vperm.slane %v1157_v58, 1 }
 0x3be   :  { %1024 = vst [vmem:[%s1872_s7] sm:$0x3] %v1022_v62  ;;  %v1025_v63 = vmul.f32 0.5, %v1022_v62  ;;  %s1244_s7 = sshll.u32 %s1478_s2, 4  ;;  %s1245_s7 = int_to_ptr.vmem [resolvable:$true] %s1244_s7 }
 0x3c0   :  { %v1026_v0 = vmul.f32 1.442695, %v1025_v63 }
 0x3c2   :  { %1389 = vpow2.f32 %v1026_v0 }
 0x3c8   :  { %v1390_v2 = vpop.eup %1389 }
 0x3c9   :  { %v1033_v3 = vmul.f32 %v1390_v2, %v1031_v1 }
 0x3cb   :  { %1035 = vrot.lane.b32.xlu0 %v1033_v3, %s1477_s3 }
 0x43d   :  { %v1036_v10 = vpop.permute.xlu0 %1035 }
 0x43e   :  { %v1038_v11 = vadd.f32 %v1036_v10, %v1022_v62  ;;  %v1159_v62 = vperm.slane %v1157_v58, 0 }
 0x440   :  { %1357 = vmatmul.msk.f32.vlgmr.msra.gmra.mxu2 %vm1040_vm3, %v1038_v11 }
 0x4c3   :  { %v1061_v20 = vpop.f32.mrf.mxu2 }
 0x4c4   :  { %v1062_v21 = vadd.f32 %v1061_v20, %v1039_v19 }
 0x4c6   :  { %1358 = vmatmul.msk.f32.vlgmr.msra.gmra.mxu1 %vm260_vm1, %v1062_v21 }
 0x4c7   :  { %1216 = vmatpush.msra.mxu1 %v1155_v30 }
 0x4c9   :  { %1217 = vmatpush.msra.mxu1 %v1152_v51 }
 0x4cb   :  { %1218 = vmatpush.msra.mxu1 %v1149_v34 }
 0x4cd   :  { %1219 = vmatpush.msra.mxu1 %v1146_v37 }
 0x4cf   :  { %1220 = vmatpush.msra.mxu1 %v1143_v41 }
 0x4d1   :  { %1221 = vmatpush.msra.mxu1 %v1140_v49 }
 0x4d3   :  { %1222 = vmatpush.msra.mxu1 %v1137_v53 }
 0x4d5   :  { %1223 = vmatpush.msra.mxu1 %v1134_v23 }
 0x543   :  { %v1094_v46 = vpop.f32.mrf.mxu1 }
 0x544   :  { %v1095_v47 = vadd.f32 %v1094_v46, %v1073_v44 }
 0x546   :  { %v1097_v45 = vmax.f32 %v1095_v47, 0.0 }
 0x548   :  { %1359 = vmatmul.msk.f32.vlgmr.msrb.gmra.mxu1 %vm260_vm1, %v1097_v45 }
 0x5c5   :  { %v1128_v55 = vpop.f32.mrf.mxu1 }
 0x5c6   :  { %v1129_v56 = vadd.f32 %v1128_v55, %v1107_v52 }
 0x5c8   :  { %v1131_v57 = vmax.f32 %v1129_v56, 0.0 }
 0x5ca   :  { %1360 = vmatmul.msk.f32.vlgmr.msrb.gmra.mxu2 %vm260_vm1, %v1131_v57  ;;  %1361 = vmatmul.msk.f32.vlgmr.msra.gmra.mxu3 %vm260_vm1, %v1131_v57 }
 0x5cb   :  { %1362 = vmatmul.msk.f32.vlgmr.msra.gmra.mxu1 %vm260_vm1, %v1131_v57 }
 0x648   :  { %v1225_v60 = vpop.f32.mrf.mxu1 }
 0x649   :  { %v1226_v63 = vadd.f32 %v1225_v60, %v1161_v59 }
 0x64b   :  { %v1232_v5 = vrot.slane %v1226_v63, 4 }
 0x64d   :  { %v1185_v0 = vpop.f32.mrf.mxu2  ;;  %v1205_v1 = vpop.f32.mrf.mxu3 }
 0x64e   :  { %v1206_v2 = vadd.f32 %v1205_v1, %v1160_v61  ;;  %v1186_v3 = vadd.f32 %v1185_v0, %v1159_v62 }
 0x650   :  { %v1231_v4 = vrot.slane %v1206_v2, 6 }
 0x652   :  { %v1234_v6 = vsel %vm1233_vm4, %v1186_v3, %v1231_v4 }
 0x653   :  { %v1236_v7 = vsel %vm1235_vm5, %v1234_v6, %v1232_v5 }
 0x654   :  { %1238 = vst [vmem:[#allocation12] sm:$0x3f] %v1236_v7 }
 0x655   :  { %1249 = dma.vmem_to_hbm [thread:$0]  %s1245_s7, 96, %s1247_s18, [#allocation9]  }
 0x656   :  { %1468 = dma.done.wait [#allocation9], 96  }
 0x657   :  { %1469 = vsyncadd [#allocation9], 4294967200 }
 0x658   :  { %1258 = vsyncpa [#allocation8], 1 }
 0x659   :  { %1259 = vsyncpa [#allocation11], 1 }
 0x65a   :  { %1260 = vsyncpa [#allocation9], 1 }

</bundles_post_ra>
